<compile_context>
chip_gen: v7x
topology: tpu7x:2x2x1
jax: 0.10.0
libtpu: 0.0.40
codegen_flags: <defaults>
</compile_context>

<pallas_src>
import math
from functools import partial

import jax
import jax.numpy as jnp
from jax.experimental import pallas as pl
from jax.experimental.pallas import tpu as pltpu


# ---------------------------------------------------------------- helpers ----
def _layernorm(x, gamma, beta, eps=1e-6):
    # Matches BERT-pytorch custom LayerNorm: gamma*(x-mean)/(std+eps)+beta
    # with torch.std (unbiased, ddof=1) and eps=1e-6.
    mean = jnp.mean(x, axis=-1, keepdims=True)
    d = x - mean
    n = x.shape[-1]
    var = jnp.sum(d * d, axis=-1, keepdims=True) * (1.0 / (n - 1))
    inv = pl.reciprocal(jnp.sqrt(var) + eps, approx=True)     # EUP, not VALU divide
    return gamma * (d * inv) + beta


def _gelu(x):
    # BERT-pytorch GELU (tanh approximation).
    return 0.5 * x * (1.0 + jnp.tanh(math.sqrt(2.0 / math.pi)
                                     * (x + 0.044715 * x * x * x)))


# ----------------------------------------------------------------- kernel ----
def transformer_block_kernel(
    x_ref, pm_ref, hm_ref, hmT_ref,
    wq_ref, bq_ref, wv_ref, bv_ref, wp_ref, bp_ref,
    ln1g_ref, ln1b_ref, ln2g_ref, ln2b_ref,
    w1_ref, b1_ref, w2_ref, b2_ref,
    o_ref,
    *, W, tq, E):
    f32 = jnp.float32
    bf16 = jnp.bfloat16
    WT = W * tq
    H = hm_ref.shape[1]

    ln1g, ln1b = ln1g_ref[...], ln1b_ref[...]

    # ---- input sublayer: x + attention(LayerNorm(x)) -------------------------
    # Full-sequence rows of this batch (all source positions s) feed the
    # attend_inputs gather; query/residual path uses only this step's tq rows.
    xnf_b = _layernorm(x_ref[...], ln1g, ln1b).astype(bf16)            # (T, E)

    r0 = pl.multiple_of(pl.program_id(1) * tq, tq)
    xq = x_ref[pl.ds(r0, tq), :]                                       # (tq, E) f32
    xnq_b = _layernorm(xq, ln1g, ln1b).astype(bf16)                    # (tq, E)

    # attend_inputs for all (w, t) rows of this query tile in one matmul.
    # pm row ordering is (w, t-within-tile) -> leading-W layout for softmax.
    ai = jnp.dot(pm_ref[...], xnf_b, preferred_element_type=f32)       # (WT, E)
    ai_b = ai.astype(bf16)

    # q / k / v projections (key reuses the query transform), resident weights.
    q = jnp.dot(xnq_b, wq_ref[...], preferred_element_type=f32) + bq_ref[...]   # (tq, E)
    k = jnp.dot(ai_b, wq_ref[...], preferred_element_type=f32) + bq_ref[...]    # (WT, E)
    v = jnp.dot(ai_b, wv_ref[...], preferred_element_type=f32) + bv_ref[...]    # (WT, E)

    # scores[w, t, h] = sum_{i in head h} q[t, i] * k[(w,t), i] / sqrt(E)
    # (1/sqrt(E) is folded into the head-selector hm in the wrapper.)
    prod = k.reshape(W, tq, E) * q[None, :, :]                         # broadcast, no tile
    scores = jnp.dot(prod.reshape(WT, E).astype(bf16), hm_ref[...],
                     preferred_element_type=f32)                       # (WT, H)

    # softmax over the window axis (leading dim -> elementwise across W slabs).
    s = scores.reshape(W, tq, H)
    s = s - jnp.max(s, axis=0, keepdims=True)
    p = jnp.exp(s)
    p = p * pl.reciprocal(jnp.sum(p, axis=0, keepdims=True), approx=True)

    # context: broadcast head probabilities back to d_k lanes, weight V, sum W.
    pb = jnp.dot(p.reshape(WT, H).astype(bf16), hmT_ref[...],
                 preferred_element_type=f32)                           # (WT, E)
    ctx = jnp.sum((pb * v).reshape(W, tq, E), axis=0)                  # (tq, E)

    attn = jnp.dot(ctx.astype(bf16), wp_ref[...],
                   preferred_element_type=f32) + bp_ref[...]
    # TODO(synk): dropout layers are identity here (eval / inference mode).
    x1 = xq + attn

    # ---- output sublayer: x1 + FFN(LayerNorm(x1)) ----------------------------
    # Elementwise intermediates kept f32 (v5e has no bf16 VALU).
    xn2 = _layernorm(x1, ln2g_ref[...], ln2b_ref[...])
    h1 = _gelu(jnp.dot(xn2.astype(bf16), w1_ref[...],
                       preferred_element_type=f32) + b1_ref[...])      # (tq, FF)
    ff = jnp.dot(h1.astype(bf16), w2_ref[...],
                 preferred_element_type=f32) + b2_ref[...]
    o_ref[...] = (x1 + ff).astype(o_ref.dtype)


# ---------------------------------------------------------------- wrapper ----
def transformer_block(x, pos_mask, params, num_heads, *, q_tile=256):
    B, T, E = x.shape
    _, W, _ = pos_mask.shape
    H = num_heads
    d_k = E // H
    FF = params['w1'].shape[0]
    bf16 = jnp.bfloat16
    f32 = jnp.float32

    # Query-row tiling: bounds peak VMEM at large T and gives a pipelined grid.
    tq = T if T <= q_tile else q_tile
    assert T % tq == 0  # TODO(synk): pad/mask a ragged last query tile when T % q_tile != 0
    NT = T // tq

    # PyTorch splits E as (d_k, H) with H fastest; permute projection output
    # features so heads become contiguous blocks of d_k inside the kernel.
    perm = jnp.arange(E).reshape(d_k, H).T.reshape(E)        # perm[h*d_k+i] = i*H+h
    wq_t = params['wq'][perm].T.astype(bf16)                 # (E, E)
    wv_t = params['wv'][perm].T.astype(bf16)                 # (E, E)
    bq_p = params['bq'][perm]
    bv_p = params['bv'][perm]

    wp_t = params['wp'].T.astype(bf16)                       # (E, E)
    w1_t = params['w1'].T.astype(bf16)                       # (E, FF)
    w2_t = params['w2'].T.astype(bf16)                       # (FF, E)

    # 0/1 head-selector matrices, precomputed once (1/sqrt(E) folded into hm).
    heads = jnp.arange(E) // d_k
    hm = ((heads[:, None] == jnp.arange(H)[None, :]).astype(f32)
          * (1.0 / math.sqrt(E))).astype(bf16)               # (E, H)
    hmT = (jnp.arange(H)[:, None] == heads[None, :]).astype(bf16)     # (H, E)

    # Per-query-tile position mask, rows ordered (tile j, window w, t in tile):
    # pm[(j, w, tt), s] = pos_mask[s, w, j*tq + tt].  Batch-independent.
    pm_k = jnp.transpose(pos_mask, (1, 2, 0))                # (W, T, T)
    pm = (pm_k.reshape(W, NT, tq, T).transpose(1, 0, 2, 3)
          .reshape(NT * W * tq, T).astype(bf16))             # (W*T, T)

    row = lambda v: v.reshape(1, -1).astype(f32)

    def resident(shape):                                     # constant index_map -> stays in VMEM
        nd = len(shape)
        return pl.BlockSpec(shape, lambda b, j, nd=nd: (0,) * nd)

    in_specs = [
        pl.BlockSpec((None, T, E), lambda b, j: (b, 0, 0)),  # x: full sequence of batch b
        pl.BlockSpec((W * tq, T), lambda b, j: (j, 0)),      # position-mask rows of tile j
        resident((E, H)), resident((H, E)),                  # head selectors
        resident((E, E)), resident((1, E)),                  # query transform
        resident((E, E)), resident((1, E)),                  # value transform
        resident((E, E)), resident((1, E)),                  # post_att
        resident((1, E)), resident((1, E)),                  # LN1 gamma/beta
        resident((1, E)), resident((1, E)),                  # LN2 gamma/beta
        resident((E, FF)), resident((1, FF)),                # FFN w1
        resident((FF, E)), resident((1, E)),                 # FFN w2
    ]
    out_spec = pl.BlockSpec((None, tq, E), lambda b, j: (b, j, 0))

    # Rough VMEM budget: 2x (double-buffered) blocks + intermediates + margin.
    blk_bytes = (T * E * 4 + W * tq * T * 2 + 2 * E * H * 2
                 + (3 * E * E + 2 * E * FF) * 2 + (9 * E + FF) * 4 + tq * E * 4)
    interm = 4 * (4 * W * tq * E + 2 * tq * FF + 8 * tq * E + 3 * W * tq * H)
    vmem_limit = int(min(max(2 * blk_bytes + 2 * interm + (4 << 20), 16 << 20), 48 << 20))

    # Cost estimate (matmul FLOPs dominate: gather, q/k/v, post_att, FFN).
    flops = int(2 * B * (W * T * T * E + T * E * E + 2 * W * T * E * E
                         + 2 * W * T * E * H + T * E * E + 2 * T * E * FF))
    transcendentals = int(B * (W * T * H + T * FF + 8 * T))
    bytes_accessed = int(2 * B * T * E * 4 + W * T * T * 2
                         + (3 * E * E + 2 * E * FF + 2 * E * H) * 2
                         + (9 * E + FF) * 4)

    kernel = partial(transformer_block_kernel, W=W, tq=tq, E=E)

    out = pl.pallas_call(
        kernel,
        out_shape=jax.ShapeDtypeStruct((B, T, E), x.dtype),
        grid_spec=pltpu.PrefetchScalarGridSpec(
            num_scalar_prefetch=0,
            grid=(B, NT),                                    # both axes independent
            in_specs=in_specs,
            out_specs=out_spec,
        ),
        compiler_params=pltpu.CompilerParams(
            dimension_semantics=("parallel", "parallel"),
            vmem_limit_bytes=vmem_limit),
        cost_estimate=pl.CostEstimate(flops=flops,
                                      transcendentals=transcendentals,
                                      bytes_accessed=bytes_accessed),
    )(x, pm, hm, hmT,
      wq_t, row(bq_p), wv_t, row(bv_p), wp_t, row(params['bp']),
      row(params['ln1_g']), row(params['ln1_b']),
      row(params['ln2_g']), row(params['ln2_b']),
      w1_t, row(params['b1']), w2_t, row(params['b2']))
    return out


# ---------------------------------------------------- pure-JAX reference -----
def ref_forward(x, pos_mask, params, num_heads):
    B, T, E = x.shape
    _, W, _ = pos_mask.shape
    H = num_heads
    d_k = E // H

    def linear(v, w, b):
        return jnp.einsum('...i,oi->...o', v, w) + b

    def ln(v, g, bt, eps=1e-6):
        m = v.mean(-1, keepdims=True)
        d = v - m
        var = jnp.sum(d * d, -1, keepdims=True) / (v.shape[-1] - 1)
        return g * d / (jnp.sqrt(var) + eps) + bt

    def gelu(v):
        return 0.5 * v * (1 + jnp.tanh(math.sqrt(2 / math.pi) * (v + 0.044715 * v ** 3)))

    def attention(xa):
        ai = jnp.matmul(jnp.swapaxes(xa, 1, 2), pos_mask.reshape(T, -1))     # (B,E,W*T)
        ai = ai.reshape(B, E, W, T).transpose(0, 3, 2, 1)                    # (B,T,W,E)
        q = linear(xa, params['wq'], params['bq']).reshape(B, T, 1, d_k, H).transpose(0, 4, 1, 2, 3)
        k = linear(ai, params['wq'], params['bq']).reshape(B, T, W, d_k, H).transpose(0, 4, 1, 2, 3)
        v = linear(ai, params['wv'], params['bv']).reshape(B, T, W, d_k, H).transpose(0, 4, 1, 2, 3)
        s = jnp.matmul(q, jnp.swapaxes(k, -2, -1)) / math.sqrt(E)            # (B,H,T,1,W)
        s = jax.nn.softmax(s, axis=-1)
        o = jnp.matmul(s, v)                                                 # (B,H,T,1,d_k)
        o = jnp.squeeze(o, 3).transpose(0, 2, 1, 3).reshape(B, T, E)
        return linear(o, params['wp'], params['bp'])

    x1 = x + attention(ln(x, params['ln1_g'], params['ln1_b']))
    xn2 = ln(x1, params['ln2_g'], params['ln2_b'])
    ff = linear(gelu(linear(xn2, params['w1'], params['b1'])), params['w2'], params['b2'])
    return x1 + ff


# ------------------------------------------------------------------- main ----
if __name__ == "__main__":
    key = jax.random.PRNGKey(0)
    B, T, E, H, W = 2, 8, 32, 4, 4          # hidden=32, attn_heads=4
    FF = 4 * E                              # feed_forward_hidden = 4*hidden

    ks = jax.random.split(key, 16)
    x = jax.random.normal(ks[0], (B, T, E), jnp.float32)
    pos_mask = (jax.random.uniform(ks[1], (T, W, T)) < 0.3).astype(jnp.float32)

    def rnd(k, shape):
        return jax.random.normal(k, shape, jnp.float32) * 0.05

    params = dict(
        wq=rnd(ks[2], (E, E)), bq=rnd(ks[3], (E,)),
        wv=rnd(ks[4], (E, E)), bv=rnd(ks[5], (E,)),
        wp=rnd(ks[6], (E, E)), bp=rnd(ks[7], (E,)),
        ln1_g=jnp.ones((E,), jnp.float32), ln1_b=jnp.zeros((E,), jnp.float32),
        ln2_g=jnp.ones((E,), jnp.float32), ln2_b=jnp.zeros((E,), jnp.float32),
        w1=rnd(ks[8], (FF, E)), b1=rnd(ks[9], (FF,)),
        w2=rnd(ks[10], (E, FF)), b2=rnd(ks[11], (E,)),
    )

    out = jax.block_until_ready(transformer_block(x, pos_mask, params, num_heads=H))
    ref = jax.block_until_ready(ref_forward(x, pos_mask, params, num_heads=H))
    assert out.shape == (B, T, E)
    # bf16 matmul operands (f32 accumulation) -> slightly looser tolerance than f32.
    assert jnp.allclose(out, ref, atol=2e-2, rtol=2e-2), \
        float(jnp.max(jnp.abs(out - ref)))
    print("KERNEL_OK")
</pallas_src>

<mosaic_0001>
module attributes {stable_mosaic.version = 11 : i64} {
  func.func @transformer_block_kernel(%arg0: i32, %arg1: i32, %arg2: memref<1x8x32xf32, #tpu.memory_space<vmem>>, %arg3: memref<32x8xbf16, #tpu.memory_space<vmem>>, %arg4: memref<32x4xbf16, #tpu.memory_space<vmem>>, %arg5: memref<4x32xbf16, #tpu.memory_space<vmem>>, %arg6: memref<32x32xbf16, #tpu.memory_space<vmem>>, %arg7: memref<1x32xf32, #tpu.memory_space<vmem>>, %arg8: memref<32x32xbf16, #tpu.memory_space<vmem>>, %arg9: memref<1x32xf32, #tpu.memory_space<vmem>>, %arg10: memref<32x32xbf16, #tpu.memory_space<vmem>>, %arg11: memref<1x32xf32, #tpu.memory_space<vmem>>, %arg12: memref<1x32xf32, #tpu.memory_space<vmem>>, %arg13: memref<1x32xf32, #tpu.memory_space<vmem>>, %arg14: memref<1x32xf32, #tpu.memory_space<vmem>>, %arg15: memref<1x32xf32, #tpu.memory_space<vmem>>, %arg16: memref<32x128xbf16, #tpu.memory_space<vmem>>, %arg17: memref<1x128xf32, #tpu.memory_space<vmem>>, %arg18: memref<128x32xbf16, #tpu.memory_space<vmem>>, %arg19: memref<1x32xf32, #tpu.memory_space<vmem>>, %arg20: memref<1x8x32xf32, #tpu.memory_space<vmem>>) attributes {dimension_semantics = [#tpu.dimension_semantics<parallel>, #tpu.dimension_semantics<parallel>], iteration_bounds = array<i64: 2, 1>, scalar_prefetch = 0 : i64, scratch_operands = 0 : i64, tpu.core_type = #tpu.core_type<tc>, window_params = [{transform_indices = @transform_0, window_bounds = array<i64: 1, 8, 32>}, {transform_indices = @transform_1, window_bounds = array<i64: 32, 8>}, {pipeline_mode = #tpu.pipeline_mode<synchronous>, transform_indices = @transform_2, window_bounds = array<i64: 32, 4>}, {pipeline_mode = #tpu.pipeline_mode<synchronous>, transform_indices = @transform_3, window_bounds = array<i64: 4, 32>}, {pipeline_mode = #tpu.pipeline_mode<synchronous>, transform_indices = @transform_4, window_bounds = array<i64: 32, 32>}, {pipeline_mode = #tpu.pipeline_mode<synchronous>, transform_indices = @transform_5, window_bounds = array<i64: 1, 32>}, {pipeline_mode = #tpu.pipeline_mode<synchronous>, transform_indices = @transform_6, window_bounds = array<i64: 32, 32>}, {pipeline_mode = #tpu.pipeline_mode<synchronous>, transform_indices = @transform_7, window_bounds = array<i64: 1, 32>}, {pipeline_mode = #tpu.pipeline_mode<synchronous>, transform_indices = @transform_8, window_bounds = array<i64: 32, 32>}, {pipeline_mode = #tpu.pipeline_mode<synchronous>, transform_indices = @transform_9, window_bounds = array<i64: 1, 32>}, {pipeline_mode = #tpu.pipeline_mode<synchronous>, transform_indices = @transform_10, window_bounds = array<i64: 1, 32>}, {pipeline_mode = #tpu.pipeline_mode<synchronous>, transform_indices = @transform_11, window_bounds = array<i64: 1, 32>}, {pipeline_mode = #tpu.pipeline_mode<synchronous>, transform_indices = @transform_12, window_bounds = array<i64: 1, 32>}, {pipeline_mode = #tpu.pipeline_mode<synchronous>, transform_indices = @transform_13, window_bounds = array<i64: 1, 32>}, {pipeline_mode = #tpu.pipeline_mode<synchronous>, transform_indices = @transform_14, window_bounds = array<i64: 32, 128>}, {pipeline_mode = #tpu.pipeline_mode<synchronous>, transform_indices = @transform_15, window_bounds = array<i64: 1, 128>}, {pipeline_mode = #tpu.pipeline_mode<synchronous>, transform_indices = @transform_16, window_bounds = array<i64: 128, 32>}, {pipeline_mode = #tpu.pipeline_mode<synchronous>, transform_indices = @transform_17, window_bounds = array<i64: 1, 32>}, {transform_indices = @transform_18, window_bounds = array<i64: 1, 8, 32>}]} {
    %c0 = arith.constant 0 : index
    %c0_0 = arith.constant 0 : index
    %0 = vector.load %arg12[%c0, %c0_0] : memref<1x32xf32, #tpu.memory_space<vmem>>, vector<1x32xf32>
    %c0_1 = arith.constant 0 : index
    %c0_2 = arith.constant 0 : index
    %1 = vector.load %arg13[%c0_1, %c0_2] : memref<1x32xf32, #tpu.memory_space<vmem>>, vector<1x32xf32>
    %c0_3 = arith.constant 0 : index
    %c0_4 = arith.constant 0 : index
    %c0_5 = arith.constant 0 : index
    %2 = vector.load %arg2[%c0_3, %c0_4, %c0_5] : memref<1x8x32xf32, #tpu.memory_space<vmem>>, vector<1x8x32xf32>
    %3 = vector.shape_cast %2 : vector<1x8x32xf32> to vector<8x32xf32>
    %cst = arith.constant dense<0.000000e+00> : vector<8xf32>
    %4 = vector.multi_reduction <add>, %3, %cst [1] : vector<8x32xf32> to vector<8xf32>
    %5 = vector.shape_cast %4 : vector<8xf32> to vector<8x1xf32>
    %cst_6 = arith.constant 3.200000e+01 : f32
    %6 = vector.broadcast %cst_6 : f32 to vector<8x1xf32>
    %7 = arith.divf %5, %6 : vector<8x1xf32>
    %8 = vector.broadcast %7 : vector<8x1xf32> to vector<8x32xf32>
    %9 = arith.subf %3, %8 : vector<8x32xf32>
    %10 = arith.mulf %9, %9 : vector<8x32xf32>
    %cst_7 = arith.constant dense<0.000000e+00> : vector<8xf32>
    %11 = vector.multi_reduction <add>, %10, %cst_7 [1] : vector<8x32xf32> to vector<8xf32>
    %12 = vector.shape_cast %11 : vector<8xf32> to vector<8x1xf32>
    %cst_8 = arith.constant 0.0322580636 : f32
    %13 = vector.broadcast %cst_8 : f32 to vector<8x1xf32>
    %14 = arith.mulf %12, %13 : vector<8x1xf32>
    %15 = math.sqrt %14 : vector<8x1xf32>
    %cst_9 = arith.constant 9.99999997E-7 : f32
    %16 = vector.broadcast %cst_9 : f32 to vector<8x1xf32>
    %17 = arith.addf %15, %16 : vector<8x1xf32>
    %18 = tpu.reciprocal %17 {approx = true} : vector<8x1xf32> -> vector<8x1xf32>
    %19 = vector.broadcast %18 : vector<8x1xf32> to vector<8x32xf32>
    %20 = arith.mulf %9, %19 : vector<8x32xf32>
    %21 = vector.broadcast %0 : vector<1x32xf32> to vector<8x32xf32>
    %22 = arith.mulf %21, %20 : vector<8x32xf32>
    %23 = vector.broadcast %1 : vector<1x32xf32> to vector<8x32xf32>
    %24 = arith.addf %22, %23 : vector<8x32xf32>
    %25 = arith.truncf %24 : vector<8x32xf32> to vector<8x32xbf16>
    %c8_i32 = arith.constant 8 : i32
    %26 = arith.muli %arg1, %c8_i32 : i32
    %27 = tpu.assume_multiple %26, 8 : i32
    %c0_10 = arith.constant 0 : index
    %28 = arith.index_cast %27 : i32 to index
    %c0_11 = arith.constant 0 : index
    %29 = vector.load %arg2[%c0_10, %28, %c0_11] : memref<1x8x32xf32, #tpu.memory_space<vmem>>, vector<1x8x32xf32>
    %30 = vector.shape_cast %29 : vector<1x8x32xf32> to vector<8x32xf32>
    %cst_12 = arith.constant dense<0.000000e+00> : vector<8xf32>
    %31 = vector.multi_reduction <add>, %30, %cst_12 [1] : vector<8x32xf32> to vector<8xf32>
    %32 = vector.shape_cast %31 : vector<8xf32> to vector<8x1xf32>
    %cst_13 = arith.constant 3.200000e+01 : f32
    %33 = vector.broadcast %cst_13 : f32 to vector<8x1xf32>
    %34 = arith.divf %32, %33 : vector<8x1xf32>
    %35 = vector.broadcast %34 : vector<8x1xf32> to vector<8x32xf32>
    %36 = arith.subf %30, %35 : vector<8x32xf32>
    %37 = arith.mulf %36, %36 : vector<8x32xf32>
    %cst_14 = arith.constant dense<0.000000e+00> : vector<8xf32>
    %38 = vector.multi_reduction <add>, %37, %cst_14 [1] : vector<8x32xf32> to vector<8xf32>
    %39 = vector.shape_cast %38 : vector<8xf32> to vector<8x1xf32>
    %cst_15 = arith.constant 0.0322580636 : f32
    %40 = vector.broadcast %cst_15 : f32 to vector<8x1xf32>
    %41 = arith.mulf %39, %40 : vector<8x1xf32>
    %42 = math.sqrt %41 : vector<8x1xf32>
    %cst_16 = arith.constant 9.99999997E-7 : f32
    %43 = vector.broadcast %cst_16 : f32 to vector<8x1xf32>
    %44 = arith.addf %42, %43 : vector<8x1xf32>
    %45 = tpu.reciprocal %44 {approx = true} : vector<8x1xf32> -> vector<8x1xf32>
    %46 = vector.broadcast %45 : vector<8x1xf32> to vector<8x32xf32>
    %47 = arith.mulf %36, %46 : vector<8x32xf32>
    %48 = vector.broadcast %0 : vector<1x32xf32> to vector<8x32xf32>
    %49 = arith.mulf %48, %47 : vector<8x32xf32>
    %50 = vector.broadcast %1 : vector<1x32xf32> to vector<8x32xf32>
    %51 = arith.addf %49, %50 : vector<8x32xf32>
    %52 = arith.truncf %51 : vector<8x32xf32> to vector<8x32xbf16>
    %c0_17 = arith.constant 0 : index
    %c0_18 = arith.constant 0 : index
    %53 = vector.load %arg3[%c0_17, %c0_18] : memref<32x8xbf16, #tpu.memory_space<vmem>>, vector<32x8xbf16>
    %cst_19 = arith.constant dense<0.000000e+00> : vector<32x32xf32>
    %54 = tpu.matmul %53, %25, %cst_19 {dimension_numbers = #tpu.dot_dimension_numbers<[1], [0], [0], [1], [0, 0, 1, 1], [], []>} : vector<32x8xbf16>, vector<8x32xbf16>, vector<32x32xf32> -> vector<32x32xf32>
    %55 = arith.truncf %54 : vector<32x32xf32> to vector<32x32xbf16>
    %c0_20 = arith.constant 0 : index
    %c0_21 = arith.constant 0 : index
    %56 = vector.load %arg6[%c0_20, %c0_21] : memref<32x32xbf16, #tpu.memory_space<vmem>>, vector<32x32xbf16>
    %cst_22 = arith.constant dense<0.000000e+00> : vector<8x32xf32>
    %57 = tpu.matmul %52, %56, %cst_22 {dimension_numbers = #tpu.dot_dimension_numbers<[1], [0], [0], [1], [0, 0, 1, 1], [], []>} : vector<8x32xbf16>, vector<32x32xbf16>, vector<8x32xf32> -> vector<8x32xf32>
    %c0_23 = arith.constant 0 : index
    %c0_24 = arith.constant 0 : index
    %58 = vector.load %arg7[%c0_23, %c0_24] : memref<1x32xf32, #tpu.memory_space<vmem>>, vector<1x32xf32>
    %59 = vector.broadcast %58 : vector<1x32xf32> to vector<8x32xf32>
    %60 = arith.addf %57, %59 : vector<8x32xf32>
    %c0_25 = arith.constant 0 : index
    %c0_26 = arith.constant 0 : index
    %61 = vector.load %arg6[%c0_25, %c0_26] : memref<32x32xbf16, #tpu.memory_space<vmem>>, vector<32x32xbf16>
    %cst_27 = arith.constant dense<0.000000e+00> : vector<32x32xf32>
    %62 = tpu.matmul %55, %61, %cst_27 {dimension_numbers = #tpu.dot_dimension_numbers<[1], [0], [0], [1], [0, 0, 1, 1], [], []>} : vector<32x32xbf16>, vector<32x32xbf16>, vector<32x32xf32> -> vector<32x32xf32>
    %c0_28 = arith.constant 0 : index
    %c0_29 = arith.constant 0 : index
    %63 = vector.load %arg7[%c0_28, %c0_29] : memref<1x32xf32, #tpu.memory_space<vmem>>, vector<1x32xf32>
    %64 = vector.broadcast %63 : vector<1x32xf32> to vector<32x32xf32>
    %65 = arith.addf %62, %64 : vector<32x32xf32>
    %c0_30 = arith.constant 0 : index
    %c0_31 = arith.constant 0 : index
    %66 = vector.load %arg8[%c0_30, %c0_31] : memref<32x32xbf16, #tpu.memory_space<vmem>>, vector<32x32xbf16>
    %cst_32 = arith.constant dense<0.000000e+00> : vector<32x32xf32>
    %67 = tpu.matmul %55, %66, %cst_32 {dimension_numbers = #tpu.dot_dimension_numbers<[1], [0], [0], [1], [0, 0, 1, 1], [], []>} : vector<32x32xbf16>, vector<32x32xbf16>, vector<32x32xf32> -> vector<32x32xf32>
    %c0_33 = arith.constant 0 : index
    %c0_34 = arith.constant 0 : index
    %68 = vector.load %arg9[%c0_33, %c0_34] : memref<1x32xf32, #tpu.memory_space<vmem>>, vector<1x32xf32>
    %69 = vector.broadcast %68 : vector<1x32xf32> to vector<32x32xf32>
    %70 = arith.addf %67, %69 : vector<32x32xf32>
    %71 = vector.shape_cast %65 : vector<32x32xf32> to vector<4x8x32xf32>
    %72 = vector.shape_cast %60 : vector<8x32xf32> to vector<1x8x32xf32>
    %73 = vector.broadcast %72 : vector<1x8x32xf32> to vector<4x8x32xf32>
    %74 = arith.mulf %71, %73 : vector<4x8x32xf32>
    %75 = vector.shape_cast %74 : vector<4x8x32xf32> to vector<32x32xf32>
    %76 = arith.truncf %75 : vector<32x32xf32> to vector<32x32xbf16>
    %c0_35 = arith.constant 0 : index
    %c0_36 = arith.constant 0 : index
    %77 = vector.load %arg4[%c0_35, %c0_36] : memref<32x4xbf16, #tpu.memory_space<vmem>>, vector<32x4xbf16>
    %cst_37 = arith.constant dense<0.000000e+00> : vector<32x4xf32>
    %78 = tpu.matmul %76, %77, %cst_37 {dimension_numbers = #tpu.dot_dimension_numbers<[1], [0], [0], [1], [0, 0, 1, 1], [], []>} : vector<32x32xbf16>, vector<32x4xbf16>, vector<32x4xf32> -> vector<32x4xf32>
    %79 = vector.shape_cast %78 : vector<32x4xf32> to vector<4x8x4xf32>
    %cst_38 = arith.constant dense<0xFF800000> : vector<8x4xf32>
    %80 = vector.multi_reduction <maximumf>, %79, %cst_38 [0] : vector<4x8x4xf32> to vector<8x4xf32>
    %81 = vector.shape_cast %80 : vector<8x4xf32> to vector<1x8x4xf32>
    %82 = vector.broadcast %81 : vector<1x8x4xf32> to vector<4x8x4xf32>
    %83 = arith.subf %79, %82 : vector<4x8x4xf32>
    %84 = math.exp %83 : vector<4x8x4xf32>
    %cst_39 = arith.constant dense<0.000000e+00> : vector<8x4xf32>
    %85 = vector.multi_reduction <add>, %84, %cst_39 [0] : vector<4x8x4xf32> to vector<8x4xf32>
    %86 = vector.shape_cast %85 : vector<8x4xf32> to vector<1x8x4xf32>
    %87 = tpu.reciprocal %86 {approx = true} : vector<1x8x4xf32> -> vector<1x8x4xf32>
    %88 = vector.broadcast %87 : vector<1x8x4xf32> to vector<4x8x4xf32>
    %89 = arith.mulf %84, %88 : vector<4x8x4xf32>
    %90 = vector.shape_cast %89 : vector<4x8x4xf32> to vector<32x4xf32>
    %91 = arith.truncf %90 : vector<32x4xf32> to vector<32x4xbf16>
    %c0_40 = arith.constant 0 : index
    %c0_41 = arith.constant 0 : index
    %92 = vector.load %arg5[%c0_40, %c0_41] : memref<4x32xbf16, #tpu.memory_space<vmem>>, vector<4x32xbf16>
    %cst_42 = arith.constant dense<0.000000e+00> : vector<32x32xf32>
    %93 = tpu.matmul %91, %92, %cst_42 {dimension_numbers = #tpu.dot_dimension_numbers<[1], [0], [0], [1], [0, 0, 1, 1], [], []>} : vector<32x4xbf16>, vector<4x32xbf16>, vector<32x32xf32> -> vector<32x32xf32>
    %94 = arith.mulf %93, %70 : vector<32x32xf32>
    %95 = vector.shape_cast %94 : vector<32x32xf32> to vector<4x8x32xf32>
    %cst_43 = arith.constant dense<0.000000e+00> : vector<8x32xf32>
    %96 = vector.multi_reduction <add>, %95, %cst_43 [0] : vector<4x8x32xf32> to vector<8x32xf32>
    %97 = arith.truncf %96 : vector<8x32xf32> to vector<8x32xbf16>
    %c0_44 = arith.constant 0 : index
    %c0_45 = arith.constant 0 : index
    %98 = vector.load %arg10[%c0_44, %c0_45] : memref<32x32xbf16, #tpu.memory_space<vmem>>, vector<32x32xbf16>
    %cst_46 = arith.constant dense<0.000000e+00> : vector<8x32xf32>
    %99 = tpu.matmul %97, %98, %cst_46 {dimension_numbers = #tpu.dot_dimension_numbers<[1], [0], [0], [1], [0, 0, 1, 1], [], []>} : vector<8x32xbf16>, vector<32x32xbf16>, vector<8x32xf32> -> vector<8x32xf32>
    %c0_47 = arith.constant 0 : index
    %c0_48 = arith.constant 0 : index
    %100 = vector.load %arg11[%c0_47, %c0_48] : memref<1x32xf32, #tpu.memory_space<vmem>>, vector<1x32xf32>
    %101 = vector.broadcast %100 : vector<1x32xf32> to vector<8x32xf32>
    %102 = arith.addf %99, %101 : vector<8x32xf32>
    %103 = arith.addf %30, %102 : vector<8x32xf32>
    %c0_49 = arith.constant 0 : index
    %c0_50 = arith.constant 0 : index
    %104 = vector.load %arg14[%c0_49, %c0_50] : memref<1x32xf32, #tpu.memory_space<vmem>>, vector<1x32xf32>
    %c0_51 = arith.constant 0 : index
    %c0_52 = arith.constant 0 : index
    %105 = vector.load %arg15[%c0_51, %c0_52] : memref<1x32xf32, #tpu.memory_space<vmem>>, vector<1x32xf32>
    %cst_53 = arith.constant dense<0.000000e+00> : vector<8xf32>
    %106 = vector.multi_reduction <add>, %103, %cst_53 [1] : vector<8x32xf32> to vector<8xf32>
    %107 = vector.shape_cast %106 : vector<8xf32> to vector<8x1xf32>
    %cst_54 = arith.constant 3.200000e+01 : f32
    %108 = vector.broadcast %cst_54 : f32 to vector<8x1xf32>
    %109 = arith.divf %107, %108 : vector<8x1xf32>
    %110 = vector.broadcast %109 : vector<8x1xf32> to vector<8x32xf32>
    %111 = arith.subf %103, %110 : vector<8x32xf32>
    %112 = arith.mulf %111, %111 : vector<8x32xf32>
    %cst_55 = arith.constant dense<0.000000e+00> : vector<8xf32>
    %113 = vector.multi_reduction <add>, %112, %cst_55 [1] : vector<8x32xf32> to vector<8xf32>
    %114 = vector.shape_cast %113 : vector<8xf32> to vector<8x1xf32>
    %cst_56 = arith.constant 0.0322580636 : f32
    %115 = vector.broadcast %cst_56 : f32 to vector<8x1xf32>
    %116 = arith.mulf %114, %115 : vector<8x1xf32>
    %117 = math.sqrt %116 : vector<8x1xf32>
    %cst_57 = arith.constant 9.99999997E-7 : f32
    %118 = vector.broadcast %cst_57 : f32 to vector<8x1xf32>
    %119 = arith.addf %117, %118 : vector<8x1xf32>
    %120 = tpu.reciprocal %119 {approx = true} : vector<8x1xf32> -> vector<8x1xf32>
    %121 = vector.broadcast %120 : vector<8x1xf32> to vector<8x32xf32>
    %122 = arith.mulf %111, %121 : vector<8x32xf32>
    %123 = vector.broadcast %104 : vector<1x32xf32> to vector<8x32xf32>
    %124 = arith.mulf %123, %122 : vector<8x32xf32>
    %125 = vector.broadcast %105 : vector<1x32xf32> to vector<8x32xf32>
    %126 = arith.addf %124, %125 : vector<8x32xf32>
    %127 = arith.truncf %126 : vector<8x32xf32> to vector<8x32xbf16>
    %c0_58 = arith.constant 0 : index
    %c0_59 = arith.constant 0 : index
    %128 = vector.load %arg16[%c0_58, %c0_59] : memref<32x128xbf16, #tpu.memory_space<vmem>>, vector<32x128xbf16>
    %cst_60 = arith.constant dense<0.000000e+00> : vector<8x128xf32>
    %129 = tpu.matmul %127, %128, %cst_60 {dimension_numbers = #tpu.dot_dimension_numbers<[1], [0], [0], [1], [0, 0, 1, 1], [], []>} : vector<8x32xbf16>, vector<32x128xbf16>, vector<8x128xf32> -> vector<8x128xf32>
    %c0_61 = arith.constant 0 : index
    %c0_62 = arith.constant 0 : index
    %130 = vector.load %arg17[%c0_61, %c0_62] : memref<1x128xf32, #tpu.memory_space<vmem>>, vector<1x128xf32>
    %131 = vector.broadcast %130 : vector<1x128xf32> to vector<8x128xf32>
    %132 = arith.addf %129, %131 : vector<8x128xf32>
    %cst_63 = arith.constant 5.000000e-01 : f32
    %133 = vector.broadcast %cst_63 : f32 to vector<8x128xf32>
    %134 = arith.mulf %133, %132 : vector<8x128xf32>
    %cst_64 = arith.constant 4.471500e-02 : f32
    %135 = vector.broadcast %cst_64 : f32 to vector<8x128xf32>
    %136 = arith.mulf %135, %132 : vector<8x128xf32>
    %137 = arith.mulf %136, %132 : vector<8x128xf32>
    %138 = arith.mulf %137, %132 : vector<8x128xf32>
    %139 = arith.addf %132, %138 : vector<8x128xf32>
    %cst_65 = arith.constant 0.797884583 : f32
    %140 = vector.broadcast %cst_65 : f32 to vector<8x128xf32>
    %141 = arith.mulf %140, %139 : vector<8x128xf32>
    %142 = math.tanh %141 : vector<8x128xf32>
    %cst_66 = arith.constant 1.000000e+00 : f32
    %143 = vector.broadcast %cst_66 : f32 to vector<8x128xf32>
    %144 = arith.addf %143, %142 : vector<8x128xf32>
    %145 = arith.mulf %134, %144 : vector<8x128xf32>
    %146 = arith.truncf %145 : vector<8x128xf32> to vector<8x128xbf16>
    %c0_67 = arith.constant 0 : index
    %c0_68 = arith.constant 0 : index
    %147 = vector.load %arg18[%c0_67, %c0_68] : memref<128x32xbf16, #tpu.memory_space<vmem>>, vector<128x32xbf16>
    %cst_69 = arith.constant dense<0.000000e+00> : vector<8x32xf32>
    %148 = tpu.matmul %146, %147, %cst_69 {dimension_numbers = #tpu.dot_dimension_numbers<[1], [0], [0], [1], [0, 0, 1, 1], [], []>} : vector<8x128xbf16>, vector<128x32xbf16>, vector<8x32xf32> -> vector<8x32xf32>
    %c0_70 = arith.constant 0 : index
    %c0_71 = arith.constant 0 : index
    %149 = vector.load %arg19[%c0_70, %c0_71] : memref<1x32xf32, #tpu.memory_space<vmem>>, vector<1x32xf32>
    %150 = vector.broadcast %149 : vector<1x32xf32> to vector<8x32xf32>
    %151 = arith.addf %148, %150 : vector<8x32xf32>
    %152 = arith.addf %103, %151 : vector<8x32xf32>
    %c0_72 = arith.constant 0 : index
    %c0_73 = arith.constant 0 : index
    %c0_74 = arith.constant 0 : index
    %153 = vector.load %arg20[%c0_72, %c0_73, %c0_74] : memref<1x8x32xf32, #tpu.memory_space<vmem>>, vector<1x8x32xf32>
    %154 = vector.shape_cast %153 : vector<1x8x32xf32> to vector<8x32xf32>
    %155 = vector.shape_cast %152 : vector<8x32xf32> to vector<1x8x32xf32>
    tpu.vector_store %arg20[%c0_72, %c0_73, %c0_74], %155 {strides = array<i32>} : memref<1x8x32xf32, #tpu.memory_space<vmem>>, vector<1x8x32xf32>,
    return
  }
  func.func @transform_0(%arg0: i32, %arg1: i32) -> (i32, i32, i32) {
    %c0_i32 = arith.constant 0 : i32
    %c0_i32_0 = arith.constant 0 : i32
    %c0_i32_1 = arith.constant 0 : i32
    return %arg0, %c0_i32, %c0_i32_0 : i32, i32, i32
  }
  func.func @transform_1(%arg0: i32, %arg1: i32) -> (i32, i32) {
    %c0_i32 = arith.constant 0 : i32
    %c0_i32_0 = arith.constant 0 : i32
    return %arg1, %c0_i32 : i32, i32
  }
  func.func @transform_2(%arg0: i32, %arg1: i32) -> (i32, i32) {
    %c0_i32 = arith.constant 0 : i32
    %c0_i32_0 = arith.constant 0 : i32
    %c0_i32_1 = arith.constant 0 : i32
    return %c0_i32, %c0_i32_0 : i32, i32
  }
  func.func @transform_3(%arg0: i32, %arg1: i32) -> (i32, i32) {
    %c0_i32 = arith.constant 0 : i32
    %c0_i32_0 = arith.constant 0 : i32
    %c0_i32_1 = arith.constant 0 : i32
    return %c0_i32, %c0_i32_0 : i32, i32
  }
  func.func @transform_4(%arg0: i32, %arg1: i32) -> (i32, i32) {
    %c0_i32 = arith.constant 0 : i32
    %c0_i32_0 = arith.constant 0 : i32
    %c0_i32_1 = arith.constant 0 : i32
    return %c0_i32, %c0_i32_0 : i32, i32
  }
  func.func @transform_5(%arg0: i32, %arg1: i32) -> (i32, i32) {
    %c0_i32 = arith.constant 0 : i32
    %c0_i32_0 = arith.constant 0 : i32
    %c0_i32_1 = arith.constant 0 : i32
    return %c0_i32, %c0_i32_0 : i32, i32
  }
  func.func @transform_6(%arg0: i32, %arg1: i32) -> (i32, i32) {
    %c0_i32 = arith.constant 0 : i32
    %c0_i32_0 = arith.constant 0 : i32
    %c0_i32_1 = arith.constant 0 : i32
    return %c0_i32, %c0_i32_0 : i32, i32
  }
  func.func @transform_7(%arg0: i32, %arg1: i32) -> (i32, i32) {
    %c0_i32 = arith.constant 0 : i32
    %c0_i32_0 = arith.constant 0 : i32
    %c0_i32_1 = arith.constant 0 : i32
    return %c0_i32, %c0_i32_0 : i32, i32
  }
  func.func @transform_8(%arg0: i32, %arg1: i32) -> (i32, i32) {
    %c0_i32 = arith.constant 0 : i32
    %c0_i32_0 = arith.constant 0 : i32
    %c0_i32_1 = arith.constant 0 : i32
    return %c0_i32, %c0_i32_0 : i32, i32
  }
  func.func @transform_9(%arg0: i32, %arg1: i32) -> (i32, i32) {
    %c0_i32 = arith.constant 0 : i32
    %c0_i32_0 = arith.constant 0 : i32
    %c0_i32_1 = arith.constant 0 : i32
    return %c0_i32, %c0_i32_0 : i32, i32
  }
  func.func @transform_10(%arg0: i32, %arg1: i32) -> (i32, i32) {
    %c0_i32 = arith.constant 0 : i32
    %c0_i32_0 = arith.constant 0 : i32
    %c0_i32_1 = arith.constant 0 : i32
    return %c0_i32, %c0_i32_0 : i32, i32
  }
  func.func @transform_11(%arg0: i32, %arg1: i32) -> (i32, i32) {
    %c0_i32 = arith.constant 0 : i32
    %c0_i32_0 = arith.constant 0 : i32
    %c0_i32_1 = arith.constant 0 : i32
    return %c0_i32, %c0_i32_0 : i32, i32
  }
  func.func @transform_12(%arg0: i32, %arg1: i32) -> (i32, i32) {
    %c0_i32 = arith.constant 0 : i32
    %c0_i32_0 = arith.constant 0 : i32
    %c0_i32_1 = arith.constant 0 : i32
    return %c0_i32, %c0_i32_0 : i32, i32
  }
  func.func @transform_13(%arg0: i32, %arg1: i32) -> (i32, i32) {
    %c0_i32 = arith.constant 0 : i32
    %c0_i32_0 = arith.constant 0 : i32
    %c0_i32_1 = arith.constant 0 : i32
    return %c0_i32, %c0_i32_0 : i32, i32
  }
  func.func @transform_14(%arg0: i32, %arg1: i32) -> (i32, i32) {
    %c0_i32 = arith.constant 0 : i32
    %c0_i32_0 = arith.constant 0 : i32
    %c0_i32_1 = arith.constant 0 : i32
    return %c0_i32, %c0_i32_0 : i32, i32
  }
  func.func @transform_15(%arg0: i32, %arg1: i32) -> (i32, i32) {
    %c0_i32 = arith.constant 0 : i32
    %c0_i32_0 = arith.constant 0 : i32
    %c0_i32_1 = arith.constant 0 : i32
    return %c0_i32, %c0_i32_0 : i32, i32
  }
  func.func @transform_16(%arg0: i32, %arg1: i32) -> (i32, i32) {
    %c0_i32 = arith.constant 0 : i32
    %c0_i32_0 = arith.constant 0 : i32
    %c0_i32_1 = arith.constant 0 : i32
    return %c0_i32, %c0_i32_0 : i32, i32
  }
  func.func @transform_17(%arg0: i32, %arg1: i32) -> (i32, i32) {
    %c0_i32 = arith.constant 0 : i32
    %c0_i32_0 = arith.constant 0 : i32
    %c0_i32_1 = arith.constant 0 : i32
    return %c0_i32, %c0_i32_0 : i32, i32
  }
  func.func @transform_18(%arg0: i32, %arg1: i32) -> (i32, i32, i32) {
    %c0_i32 = arith.constant 0 : i32
    %c0_i32_0 = arith.constant 0 : i32
    return %arg0, %arg1, %c0_i32 : i32, i32, i32
  }
}

</mosaic_0001>

<bundles_post_ra>
// kernel: tpu_custom_call.1
= control target key start
LH: loop header
LB: loop body
LE: loop exit
PB: predicated region body
PF: predicated region fallthrough
CT: control target
= control target key end

     0   :  { %s2248_s0 = inlined_call_operand.vmem [shape: f32[2,8,32], index: 0, kind: input, shape index: {}]   ;;  %s2249_s1 = inlined_call_operand.vmem [shape: bf16[32,8], index: 1, kind: input, shape index: {}]   ;;  %s2250_s2 = inlined_call_operand.vmem [shape: bf16[32,4], index: 2, kind: input, shape index: {}]   ;;  %s2251_s3 = inlined_call_operand.vmem [shape: bf16[4,32], index: 3, kind: input, shape index: {}]   ;;  %s2252_s4 = inlined_call_operand.vmem [shape: bf16[32,32], index: 4, kind: input, shape index: {}]   ;;  %s2253_s5 = inlined_call_operand.vmem [shape: f32[1,32], index: 5, kind: input, shape index: {}]   ;;  %s2254_s6 = inlined_call_operand.vmem [shape: bf16[32,32], index: 6, kind: input, shape index: {}]   ;;  %s2255_s7 = inlined_call_operand.vmem [shape: f32[1,32], index: 7, kind: input, shape index: {}]   ;;  %s2256_s8 = inlined_call_operand.vmem [shape: bf16[32,32], index: 8, kind: input, shape index: {}]   ;;  %s2257_s9 = inlined_call_operand.vmem [shape: f32[1,32], index: 9, kind: input, shape index: {}]   ;;  %s2258_s10 = inlined_call_operand.vmem [shape: f32[1,32], index: 10, kind: input, shape index: {}]   ;;  %s2259_s11 = inlined_call_operand.vmem [shape: f32[1,32], index: 11, kind: input, shape index: {}]   ;;  %s2260_s12 = inlined_call_operand.vmem [shape: f32[1,32], index: 12, kind: input, shape index: {}]   ;;  %s2261_s13 = inlined_call_operand.vmem [shape: f32[1,32], index: 13, kind: input, shape index: {}]   ;;  %s2262_s14 = inlined_call_operand.vmem [shape: bf16[32,128], index: 14, kind: input, shape index: {}]   ;;  %s2263_s15 = inlined_call_operand.vmem [shape: f32[1,128], index: 15, kind: input, shape index: {}]   ;;  %s2264_s16 = inlined_call_operand.vmem [shape: bf16[128,32], index: 16, kind: input, shape index: {}]   ;;  %s2265_s17 = inlined_call_operand.vmem [shape: f32[1,32], index: 17, kind: input, shape index: {}]   ;;  %s2266_s18 = inlined_call_operand.hbm [shape: f32[2,8,32], index: 18, kind: output, shape index: {}]  }
   0x1   :  { %2272 = sst [smem:[#allocation8_spill]] %s2248_s0 }
   0x2   :  { %2273 = sst [smem:[#allocation9_spill]] %s2249_s1 }
   0x3   :  { %2274 = sst [smem:[#allocation10_spill]] %s2250_s2 }
   0x4   :  { %2275 = sst [smem:[#allocation11_spill]] %s2251_s3 }
   0x5   :  { %2276 = sst [smem:[#allocation12_spill]] %s2252_s4 }
   0x6   :  { %2277 = sst [smem:[#allocation13_spill]] %s2253_s5 }
   0x7   :  { %2278 = sst [smem:[#allocation14_spill]] %s2254_s6 }
   0x8   :  { %2279 = sst [smem:[#allocation15_spill]] %s2255_s7 }
   0x9   :  { %23 = vsyncpa [#allocation3], 0 }
   0xa   :  { %25 = vsyncpa [#allocation3 + $0x1], 0  ;;  %s1970_s27 = smov 0   ;;  %s1972_s28 = smov 0  }
   0xb   :  { %s1974_s29 = smov 0   ;;  %s1976_s30 = smov 0  }
   0xc   :  { %s1978_s0 = smov 0   ;;  %s1980_s19 = smov 0  }
   0xd LB: > { %2280 = sst [smem:[#allocation5_spill]] %s1850_s27  ;;  %s1519_s1 = sadd.s32 4294967295, %s1870_s19   ;;  %s1870_s19 = sphi %s1980_s19, %s31_s19   ;;  %s1866_s0 = sphi %s1978_s0, %s2295_s0   ;;  %s1862_s30 = sphi %s1976_s30, %s2294_s30   ;;  %s1858_s29 = sphi %s1974_s29, %s2298_s29   ;;  %s1854_s28 = sphi %s1972_s28, %s2297_s28   ;;  %s1850_s27 = sphi %s1970_s27, %s2296_s27  }
   0xe   : > { %2281 = sst [smem:[#allocation6_spill]] %s1866_s0  ;;  %s1520_s20 = sadd.s32 4294967294, %s1870_s19  }
   0xf   : > { %s43_s21 = sadd.s32 1, %s1866_s0  ;;  %s440_s22 = sadd.s32 1, %s1858_s29 }
  0x10   : > { %p45_p0 = scmp.ge.s32.totalorder %s43_s21, 2  ;;  %p450_p1 = scmp.ne.s32.totalorder %s1858_s29, %s1854_s28 }
  0x11   : > { %p451_p2 = scmp.eq.s32.totalorder %s1519_s1, 1  ;;  %p456_p3 = scmp.ne.s32.totalorder %s1854_s28, %s1850_s27 }
  0x12   : > { %s2300_s21 = smov (%p45_p0, %s43_s21), 0  ;;  %p457_p5 = scmp.eq.s32.totalorder %s1520_s20, 1 }
  0x13   : > { %2282 = sst [smem:[#allocation7_spill]] %s2300_s21  ;;  %p2010_p4 = por %p451_p2, %p450_p1 }
  0x14   : > { %s435_s23 = ssub.s32 %s1866_s0, %s2300_s21  ;;  %p1524_p6 = scmp.ge.s32.totalorder %s1870_s19, 1 }
  0x15   : > { %p438_p7 = scmp.eq.s32.totalorder %s435_s23, 0  ;;  %p2017_p8 = por %p457_p5, %p456_p3 }
  0x16   : > { %p539_p9 = scmp.lt.s32.totalorder %s1870_s19, 3 }
  0x17   : > { %s2023_s25 = scalar_select %p438_p7, %s1858_s29, %s440_s22  }
  0x18   : > { %p540_p10 = pnand %p1524_p6, %p539_p9 }
  0x19   : > { %p597_p11 = scmp.lt.s32.totalorder (!%p540_p10), %s1862_s30, 1  ;;  %vm611_vm0 = vcmask (!%p540_p10), 261120   ;;  %s2285_s21 = sld [smem:[#allocation8_spill]] (!%p540_p10)  ;;  %vm688_vm1 = vcmask (!%p540_p10), 64512   ;;  %v1527_v30 = vld [vmem:[%s2258_s10] ss:$0 sm:$0xff] (!%p540_p10) }
  0x1a   : > { %543 = sbr.rel (%p540_p10) target bundleno = 2314 (0x90a), region = 92  ;;  %v1528_v33 = vld [vmem:[%s2259_s11] ss:$0 sm:$0xff] (!%p540_p10)  ;;  %vm695_vm6 = vcmask (!%p540_p10), 1043456   ;;  %s2287_s4 = sld [smem:[#allocation12_spill]] (!%p540_p10)  ;;  %v1872_v42 = vmov (!%p540_p10), 0.0  }
  0x1b   : > { %vm1873_vm7 = vmmov (!%p540_p10), 0   ;;  %s2288_s6 = sld [smem:[#allocation14_spill]] (!%p540_p10)  ;;  %s2290_s5 = sld [smem:[#allocation13_spill]] (!%p540_p10)  ;;  %vm1061_vm8 = vcmask (!%p540_p10), 1041408   ;;  %vm1020_vm9 = vcmask (!%p540_p10), 31744  }
  0x1c   : > { %s2291_s3 = sld [smem:[#allocation11_spill]] (!%p540_p10)  ;;  %s2292_s7 = sld [smem:[#allocation15_spill]] (!%p540_p10) }
  0x20   : > { %v1750_v41 = vld [vmem:[%s2287_s4] sm:$0xff] (!%p540_p10)   ;;  %v1751_v44 = vld [vmem:[%s2287_s4 + $0x8] sm:$0xff] (!%p540_p10)  }
  0x21   : > { %s598_s26 = scalar_select %p597_p11, %s1862_s30, 1  ;;  %v1752_v46 = vld [vmem:[%s2288_s6] sm:$0xff]   ;;  %v1753_v53 = vld [vmem:[%s2288_s6 + $0x8] sm:$0xff]  }
  0x22   : > { %v1533_v60 = vld [vmem:[%s2290_s5] ss:$0 sm:$0xff] }
  0x23   : > { %s1526_s1 = sshll.u32 %s598_s26, 3  ;;  %s2289_s26 = sld [smem:[#allocation10_spill]] }
  0x24   : > { %s600_s0 = scalar_lea.vmem %s2285_s21, %s1526_s1  ;;  %s2286_s21 = sld [smem:[#allocation9_spill]] }
  0x25   : > { %v2030_v0 = vld [vmem:[%s600_s0] sm:$0xff]  ;;  %s594_s1 = sand.u32 1, %s1854_s28   ;;  %s1570_s0 = sshll.u32 %s1862_s30, 7 }
  0x26   : > { %v612_v1 = vsel %vm611_vm0, %v2030_v0, 0.0  ;;  %s1525_s20 = sshll.u32 %s594_s1, 3  ;;  %s2200_s6 = scalar_lea.hbm %s2266_s18, %s1570_s0 }
  0x27   : > { %613 = vadd.xlane.f32.xlu0 %v612_v1  ;;  %652 = vadd.xlane.f32.xlu1 %v612_v1  ;;  %s596_s4 = scalar_lea.vmem [#allocation2], %s1525_s20  ;;  %s1420_s30 = scalar_lea.sflag [#allocation3], %s594_s1 }
  0x28   : > { %s1434_s22 = sshll.u32 %s596_s4, 4  ;;  %s2202_s22 = int_to_ptr.vmem [resolvable:$true] %s1434_s22 }
  0x29   : > { %v1754_v58 = vld [vmem:[%s2289_s26] sm:$0xff]   ;;  %v1755_v59 = vld [vmem:[%s2289_s26 + $0x8] sm:$0xff]   ;;  %s1792_s20 = scalar_lea.vmem %s2202_s22, 128 }
  0x2a   : > { %v1748_v12 = vld [vmem:[%s2286_s21] sm:$0xff]   ;;  %v1749_v40 = vld [vmem:[%s2286_s21 + $0x8] sm:$0xff]   ;;  %1639 = vmatprep.subr.bf16.mxu0 %v1754_v58  ;;  %p1793_p12 = scmp.ne.s32.totalorder %s2202_s22, %s1792_s20 }
  0x2b   : > { %1611 = vmatprep.mubr.msk.bf16.mxu1 %vm688_vm1, %v1748_v12  ;;  %1640 = vmatpush3.bf16.msra.mxu0 %v1754_v58  ;;  %v1757_v58 = vld [vmem:[%s2256_s8 + $0x8] sm:$0xff]  }
  0x2c   : > { %1641 = vmatprep.subr.bf16.mxu0 %v1755_v59  ;;  %p1794_p13 = pnand %p1793_p12, %p2010_p4 }
  0x2e   : > { %p1795_p0 = pneg %p1794_p13 }
  0x2f   : > { %1642 = vmatpush3.bf16.msra.mxu0 %v1755_v59  ;;  %v1539_v59 = vld [vmem:[%s2292_s7] ss:$0 sm:$0xff] }
  0x30   : > { %1653 = vmatprep.subr.bf16.mxu0 %v1872_v42 }
  0xb4   : > { %v614_v2 = vpop.xlane.xlu0 %613  ;;  %v653_v3 = vpop.xlane.xlu1 %652 }
  0xb5   : > { %v616_v4 = vmul.f32 0.03125, %v614_v2  ;;  %v654_v5 = vmul.f32 0.03125, %v653_v3 }
  0xb7   : > { %v617_v6 = vsub.f32 %v2030_v0, %v616_v4  ;;  %v655_v7 = vsub.f32 %v2030_v0, %v654_v5 }
  0xb9   : > { %v618_v8 = vmul.f32 %v617_v6, %v617_v6  ;;  %v656_v9 = vmul.f32 %v655_v7, %v655_v7 }
  0xbb   : > { %v619_v10 = vsel %vm611_vm0, %v618_v8, 0.0  ;;  %v657_v11 = vsel %vm611_vm0, %v656_v9, 0.0 }
  0xbc   : > { %620 = vadd.xlane.f32.xlu0 %v619_v10  ;;  %658 = vadd.xlane.f32.xlu1 %v657_v11 }
 0x149   : > { %v621_v13 = vpop.xlane.xlu0 %620  ;;  %v659_v14 = vpop.xlane.xlu1 %658 }
 0x14a   : > { %v622_v15 = vmul.f32 0.032258064, %v621_v13  ;;  %v660_v16 = vmul.f32 0.032258064, %v659_v14 }
 0x14c   : > { %1768 = vrsqrt.f32 %v622_v15  ;;  %vm663_vm2 = vcmp.eq.f32.partialorder %v660_v16, inf  ;;  %v666_v20 = vand.u32 2147483648, %v660_v16  ;;  %vm625_vm3 = vcmp.eq.f32.partialorder %v622_v15, inf }
 0x14d   : > { %1770 = vrsqrt.f32 %v660_v16  ;;  %v628_v21 = vand.u32 2147483648, %v622_v15  ;;  %vm665_vm4 = vcmp.eq.f32.partialorder %v660_v16, 0.0  ;;  %vm627_vm5 = vcmp.eq.f32.partialorder %v622_v15, 0.0 }
 0x156   : > { %v1769_v17 = vpop.eup %1768 }
 0x157   : > { %v1771_v18 = vpop.eup %1770  ;;  %v624_v19 = vmul.f32 %v1769_v17, %v622_v15  ;;  %v1054_v17 = vld [vmem:[%s2291_s3] sm:$0x3]  ;;  %s1874_s3 = smov [#allocation2]  }
 0x158   : > { %v662_v22 = vmul.f32 %v1771_v18, %v660_v16  ;;  %v1063_v18 = vsel %vm1061_vm8, %v1054_v17, 0  ;;  %s1796_s27 = sshll.u32 %s1874_s3, 4  ;;  %s1797_s27 = int_to_ptr.vmem [resolvable:$false] %s1796_s27 }
 0x159   : > { %v626_v23 = vsel %vm625_vm3, %v622_v15, %v624_v19  ;;  %s1798_s7 = scalar_lea.vmem %s1797_s27, 256  ;;  %p1799_p1 = scmp.lt.s32.totalorder %s2202_s22, %s1797_s27 }
 0x15a   : > { %v664_v24 = vsel %vm663_vm2, %v660_v16, %v662_v22  ;;  %v629_v25 = vsel %vm627_vm5, %v628_v21, %v626_v23  ;;  %p1800_p2 = scmp.lt.s32.totalorder %s1798_s7, %s1792_s20 }
 0x15b   : > { %v630_v26 = vadd.f32 1e-06, %v629_v25  ;;  %v667_v27 = vsel %vm665_vm4, %v666_v20, %v664_v24 }
 0x15c   : > { %v668_v28 = vadd.f32 1e-06, %v667_v27  ;;  %p1801_p3 = por %p1800_p2, %p1799_p1 }
 0x15d   : > { %1772 = vrcp.f32 %v630_v26 }
 0x15e   : > { %1774 = vrcp.f32 %v668_v28  ;;  %p1802_p5 = pnand %p1801_p3, %p1795_p0 }
 0x167   : > { %v1773_v29 = vpop.eup %1772 }
 0x168   : > { %v632_v31 = vmul.f32 %v1773_v29, %v617_v6  ;;  %v1775_v32 = vpop.eup %1774 }
 0x169   : > { %v670_v36 = vmul.f32 %v1775_v32, %v655_v7 }
 0x16a   : > { %v639_v34 = vmul.f32 %v1527_v30, %v632_v31 }
 0x16b   : > { %v671_v38 = vmul.f32 %v1527_v30, %v670_v36 }
 0x16c   : > { %v646_v35 = vadd.f32 %v1528_v33, %v639_v34 }
 0x16d   : > { %v672_v43 = vadd.f32 %v1528_v33, %v671_v38 }
 0x16e   : > { %v647_v37 = vpack.c.bf16 %v646_v35, %v646_v35 }
 0x16f   : > { %v673_v45 = vpack.c.bf16 %v672_v43, %v672_v43 }
 0x170   : > { %1689 = vmatprep.subr.msk.bf16.mxu1 %vm695_vm6, %v647_v37  ;;  %v697_v39 = vsel %vm695_vm6, %v647_v37, 0 }
 0x171   : > { %1610 = vmatpush3.bf16.msra.mxu1 %v697_v39 }
 0x172   : > { %1615 = vmatprep.subr.bf16.mxu1 %v1872_v42 }
 0x174   : > { %1612 = vmatmul.mubr.msk.bf16.vlgmr.msra.gmra.mrb[0].mxu1 %vm688_vm1, %v1749_v40 }
 0x175   : > { %1616 = vmatpush3.bf16.msra.mxu1 %v1750_v41  ;;  %1619 = vmatprep.mubr.msk.bf16.mxu1 %vm1873_vm7, %v1872_v42 }
 0x176   : > { %1617 = vmatprep.subr.bf16.mxu1 %v1872_v42 }
 0x179   : > { %1618 = vmatpush3.bf16.msra.mxu1 %v1751_v44 }
 0x17a   : > { %1623 = vmatprep.subr.bf16.mxu1 %v1750_v41 }
 0x17c   : > { %1620 = vmatmul.mubr.msk.bf16.vlgmr.msra.gmra.mrb[4].mxu1 %vm611_vm0, %v673_v45 }
 0x17d   : > { %1624 = vmatpush3.bf16.msra.mxu1 %v1750_v41 }
 0x17e   : > { %1625 = vmatprep.subr.bf16.mxu1 %v1751_v44 }
 0x181   : > { %1626 = vmatpush3.bf16.msra.mxu1 %v1751_v44 }
 0x182   : > { %1631 = vmatprep.subr.bf16.mxu1 %v1752_v46 }
 0x247   : > { %v1613_v47 = vpop.f32.mrb[0].mxu1 }
 0x248   : > { %v733_v48 = vpop.f32.mrb[1].mxu1 }
 0x249   : > { %v1614_v49 = vpop.f32.mrb[2].mxu1 }
 0x24a   : > { %v749_v50 = vpack.c.bf16 %v1614_v49, %v1613_v47  ;;  %v736_v51 = vpop.f32.mrb[3].mxu1 }
 0x24b   : > { %v748_v52 = vpack.c.bf16 %v736_v51, %v733_v48 }
 0x24d   : > { %1627 = vmatprep.mubr.msk.bf16.mxu1 %vm611_vm0, %v748_v52 }
 0x24e   : > { %1628 = vmatmul.mubr.msk.bf16.vlgmr.msra.gmra.mrb[8].mxu1 %vm611_vm0, %v749_v50 }
 0x24f   : > { %1632 = vmatpush3.bf16.msra.mxu1 %v1752_v46  ;;  %1635 = vmatprep.mubr.msk.bf16.mxu1 %vm611_vm0, %v748_v52  ;;  %v810_v54 = vpop.f32.mrb[4].mxu1 }
 0x250   : > { %1633 = vmatprep.subr.bf16.mxu1 %v1753_v53  ;;  %v1621_v55 = vpop.f32.mrb[5].mxu1  ;;  %v811_v62 = vadd.f32 %v1533_v60, %v810_v54 }
 0x251   : > { %v813_v56 = vpop.f32.mrb[6].mxu1 }
 0x252   : > { %v1622_v57 = vpop.f32.mrb[7].mxu1 }
 0x253   : > { %1634 = vmatpush3.bf16.msra.mxu1 %v1753_v53  ;;  %v1756_v57 = vld [vmem:[%s2256_s8] sm:$0xff]  }
 0x254   : > { %1690 = vmatprep.subr.msk.bf16.mxu1 %vm1061_vm8, %v1054_v17 }
 0x256   : > { %1636 = vmatmul.mubr.msk.bf16.vlgmr.msra.gmra.mrb[12].mxu1 %vm611_vm0, %v749_v50 }
 0x257   : > { %1648 = vmatpush3.bf16.msra.mxu1 %v1063_v18 }
 0x258   : > { %1661 = vmatprep.subr.bf16.mxu1 %v1872_v42 }
 0x321   : > { %v1629_v61 = vpop.f32.mrb[8].mxu1 }
 0x322   : > { %v865_v63 = vadd.f32 %v1629_v61, %v1533_v60  ;;  %v856_v1 = vpop.f32.mrb[9].mxu1 }
 0x323   : > { %v857_v2 = vadd.f32 %v1533_v60, %v856_v1  ;;  %v1630_v3 = vpop.f32.mrb[10].mxu1 }
 0x324   : > { %v945_v4 = vmul.f32 %v865_v63, %v811_v62  ;;  %v868_v5 = vadd.f32 %v1630_v3, %v1533_v60  ;;  %v859_v6 = vpop.f32.mrb[11].mxu1 }
 0x325   : > { %v943_v7 = vmul.f32 %v857_v2, %v811_v62  ;;  %v860_v8 = vadd.f32 %v1533_v60, %v859_v6 }
 0x326   : > { %v946_v9 = vmul.f32 %v868_v5, %v811_v62 }
 0x327   : > { %v944_v10 = vmul.f32 %v860_v8, %v811_v62 }
 0x328   : > { %v948_v11 = vpack.c.bf16 %v946_v9, %v945_v4 }
 0x329   : > { %v2083_v12 = vpop.f32.mrb[12].mxu1  ;;  %v947_v13 = vpack.c.bf16 %v944_v10, %v943_v7 }
 0x32a   : > { %v2085_v14 = vpop.f32.mrb[13].mxu1  ;;  %v937_v60 = vadd.f32 %v2083_v12, %v1539_v59 }
 0x32b   : > { %v2087_v15 = vpop.f32.mrb[14].mxu1  ;;  %1643 = vmatprep.mubr.msk.bf16.mxu0 %vm611_vm0, %v947_v13  ;;  %v929_v61 = vadd.f32 %v1539_v59, %v2085_v14 }
 0x32c   : > { %v2090_v16 = vpop.f32.mrb[15].mxu1  ;;  %1644 = vmatmul.mubr.msk.bf16.vlgmr.msra.gmra.mrb[0].mxu0 %vm611_vm0, %v948_v11  ;;  %v940_v63 = vadd.f32 %v2087_v15, %v1539_v59 }
 0x32d   : > { %1657 = vmatprep.mubr.msk.bf16.mxu0 %vm1873_vm7, %v1872_v42  ;;  %1654 = vmatpush3.bf16.msra.mxu0 %v1756_v57  ;;  %v932_v3 = vadd.f32 %v1539_v59, %v2090_v16  ;;  %v1550_v16 = vld [vmem:[%s2257_s9] ss:$0 sm:$0xff] }
 0x32e   : > { %1655 = vmatprep.subr.bf16.mxu0 %v1872_v42 }
 0x331   : > { %1656 = vmatpush3.bf16.msra.mxu0 %v1757_v58 }
 0x332   : > { %1669 = vmatprep.subr.bf16.mxu0 %v1872_v42 }
 0x3ff   : > { %v1645_v19 = vpop.f32.mrb[0].mxu0 }
 0x400   : > { %v1005_v20 = vpop.f32.mrb[1].mxu0  ;;  %v1023_v22 = vsel %vm1020_vm9, %v1645_v19, -inf }
 0x401   : > { %v1646_v21 = vpop.f32.mrb[2].mxu0  ;;  %v1021_v25 = vsel %vm1020_vm9, %v1005_v20, -inf }
 0x402   : > { %v1024_v23 = vsel %vm1020_vm9, %v1646_v21, -inf  ;;  %v1008_v24 = vpop.f32.mrb[3].mxu0 }
 0x403   : > { %v1026_v26 = vmax.f32 %v1023_v22, %v1024_v23  ;;  %v1022_v27 = vsel %vm1020_vm9, %v1008_v24, -inf }
 0x404   : > { %v1025_v28 = vmax.f32 %v1021_v25, %v1022_v27 }
 0x406   : > { %v1027_v29 = vmax.f32 %v1025_v28, %v1026_v26 }
 0x408   : > { %v1028_v30 = vsub.f32 %v1005_v20, %v1027_v29  ;;  %v1029_v31 = vsub.f32 %v1008_v24, %v1027_v29  ;;  %v1030_v32 = vsub.f32 %v1645_v19, %v1027_v29  ;;  %v1031_v33 = vsub.f32 %v1646_v21, %v1027_v29 }
 0x40a   : > { %v1032_v34 = vmul.f32 1.442695, %v1028_v30  ;;  %v1034_v35 = vmul.f32 1.442695, %v1029_v31  ;;  %v1036_v36 = vmul.f32 1.442695, %v1030_v32 }
 0x40b   : > { %v1038_v37 = vmul.f32 1.442695, %v1031_v33  ;;  %v1758_v30 = vld [vmem:[%s2262_s14] sm:$0xff]  }
 0x40c   : > { %1776 = vpow2.f32 %v1032_v34  ;;  %v1760_v31 = vld [vmem:[%s2264_s16] sm:$0xff]  }
 0x40d   : > { %1778 = vpow2.f32 %v1034_v35 }
 0x40e   : > { %1780 = vpow2.f32 %v1036_v36 }
 0x40f   : > { %1782 = vpow2.f32 %v1038_v37 }
 0x416   : > { %v1777_v38 = vpop.eup %1776 }
 0x417   : > { %v1779_v39 = vpop.eup %1778  ;;  %v1040_v40 = vsel %vm1020_vm9, %v1777_v38, 0.0 }
 0x418   : > { %v1781_v41 = vpop.eup %1780  ;;  %v1041_v43 = vsel %vm1020_vm9, %v1779_v39, 0.0 }
 0x419   : > { %v1783_v44 = vpop.eup %1782  ;;  %v1042_v45 = vadd.f32 %v1041_v43, %v1040_v40  ;;  %v1043_v46 = vsel %vm1020_vm9, %v1781_v41, 0.0 }
 0x41a   : > { %v1045_v48 = vsel %vm1020_vm9, %v1783_v44, 0.0 }
 0x41b   : > { %v1044_v47 = vadd.f32 %v1043_v46, %v1042_v45 }
 0x41d   : > { %v1046_v49 = vadd.f32 %v1045_v48, %v1044_v47  ;;  %v1761_v48 = vld [vmem:[%s2264_s16 + $0x8] sm:$0xff]  }
 0x41f   : > { %1784 = vrcp.f32 %v1046_v49  ;;  %v1762_v49 = vld [vmem:[%s2264_s16 + $0x10] sm:$0xff]  }
 0x429   : > { %v1785_v50 = vpop.eup %1784 }
 0x42a   : > { %v1048_v51 = vmul.f32 %v1785_v50, %v1777_v38  ;;  %v1049_v52 = vmul.f32 %v1785_v50, %v1779_v39  ;;  %v1050_v53 = vmul.f32 %v1785_v50, %v1781_v41  ;;  %v1051_v54 = vmul.f32 %v1785_v50, %v1783_v44  ;;  %v1554_v41 = vld [vmem:[%s2260_s12] ss:$0 sm:$0xff]  ;;  %v1763_v50 = vld [vmem:[%s2264_s16 + $0x18] sm:$0xff]  }
 0x42b   : > { %v1555_v44 = vld [vmem:[%s2261_s13] ss:$0 sm:$0xff] }
 0x42c   : > { %v1052_v55 = vpack.c.bf16 %v1049_v52, %v1048_v51  ;;  %v1053_v56 = vpack.c.bf16 %v1051_v54, %v1050_v53  ;;  %v1764_v51 = vld [vmem:[%s2264_s16 + $0x20] sm:$0xff]   ;;  %v1765_v52 = vld [vmem:[%s2264_s16 + $0x28] sm:$0xff]   ;;  %v1766_v53 = vld [vmem:[%s2264_s16 + $0x30] sm:$0xff]  }
 0x42d   : > { %v1767_v54 = vld [vmem:[%s2264_s16 + $0x38] sm:$0xff]  }
 0x42e   : > { %1649 = vmatprep.mubr.msk.bf16.mxu1 %vm1020_vm9, %v1052_v55  ;;  %v1556_v55 = vld [vmem:[%s2263_s15] ss:$0 sm:$0xff] }
 0x42f   : > { %1650 = vmatmul.mubr.msk.bf16.vlgmr.msra.gmra.mrb[16].mxu1 %vm1020_vm9, %v1053_v56 }
 0x430   : > { %1665 = vmatprep.mubr.msk.bf16.mxu1 %vm1873_vm7, %v1872_v42  ;;  %1662 = vmatpush3.bf16.msra.mxu1 %v1758_v30 }
 0x431   : > { %1663 = vmatprep.subr.bf16.mxu1 %v1872_v42 }
 0x502   : > { %v1651_v62 = vpop.f32.mrb[16].mxu1 }
 0x503   : > { %v1116_v1 = vmul.f32 %v1651_v62, %v937_v60  ;;  %v1099_v2 = vpop.f32.mrb[17].mxu1 }
 0x504   : > { %v1114_v4 = vmul.f32 %v1099_v2, %v929_v61  ;;  %v1652_v5 = vpop.f32.mrb[18].mxu1 }
 0x505   : > { %v1117_v6 = vmul.f32 %v1652_v5, %v940_v63  ;;  %v1102_v7 = vpop.f32.mrb[19].mxu1  ;;  %v1121_v12 = vsel %vm611_vm0, %v1116_v1, 0.0 }
 0x506   : > { %v1115_v8 = vmul.f32 %v1102_v7, %v932_v3  ;;  %v1118_v9 = vsel %vm611_vm0, %v1114_v4, 0.0  ;;  %v1560_v7 = vld [vmem:[%s2265_s17] ss:$0 sm:$0xff] }
 0x507   : > { %v1123_v14 = vsel %vm611_vm0, %v1117_v6, 0.0 }
 0x508   : > { %v1119_v10 = vsel %vm611_vm0, %v1115_v8, 0.0 }
 0x509   : > { %v1120_v11 = vadd.f32 %v1119_v10, %v1118_v9 }
 0x50b   : > { %v1122_v13 = vadd.f32 %v1121_v12, %v1120_v11 }
 0x50d   : > { %v1124_v15 = vadd.f32 %v1123_v14, %v1122_v13 }
 0x50f   : > { %v1125_v17 = vpack.c.bf16 %v1124_v15, %v1124_v15 }
 0x511   : > { %1658 = vmatmul.mubr.msk.bf16.vlgmr.msra.gmra.mrb[4].mxu0 %vm611_vm0, %v1125_v17 }
 0x512   : > { %1685 = vmatprep.mubr.msk.bf16.mxu0 %vm1873_vm7, %v1872_v42  ;;  %1670 = vmatpush3.bf16.msra.mxu0 %v1760_v31 }
 0x513   : > { %1671 = vmatprep.subr.bf16.mxu0 %v1872_v42 }
 0x516   : > { %1672 = vmatpush3.bf16.msra.mxu0 %v1761_v48 }
 0x517   : > { %1673 = vmatprep.subr.bf16.mxu0 %v1872_v42 }
 0x51a   : > { %1674 = vmatpush3.bf16.msra.mxu0 %v1762_v49 }
 0x51b   : > { %1675 = vmatprep.subr.bf16.mxu0 %v1872_v42 }
 0x51e   : > { %1676 = vmatpush3.bf16.msra.mxu0 %v1763_v50 }
 0x51f   : > { %1677 = vmatprep.subr.bf16.mxu0 %v1872_v42 }
 0x522   : > { %1678 = vmatpush3.bf16.msra.mxu0 %v1764_v51 }
 0x523   : > { %1679 = vmatprep.subr.bf16.mxu0 %v1872_v42 }
 0x526   : > { %1680 = vmatpush3.bf16.msra.mxu0 %v1765_v52 }
 0x527   : > { %1681 = vmatprep.subr.bf16.mxu0 %v1872_v42 }
 0x52a   : > { %1682 = vmatpush3.bf16.msra.mxu0 %v1766_v53 }
 0x52b   : > { %1683 = vmatprep.subr.bf16.mxu0 %v1872_v42 }
 0x52e   : > { %1684 = vmatpush3.bf16.msra.mxu0 %v1767_v54 }
 0x5e4   : > { %v1186_v18 = vpop.f32.mrb[4].mxu0 }
 0x5e5   : > { %v1187_v19 = vadd.f32 %v1550_v16, %v1186_v18  ;;  %v1659_v20 = vpop.f32.mrb[5].mxu0 }
 0x5e6   : > { %v1189_v21 = vpop.f32.mrb[6].mxu0 }
 0x5e7   : > { %v2137_v22 = vadd.f32 %v1187_v19, %v2030_v0  ;;  %v1660_v23 = vpop.f32.mrb[7].mxu0  ;;  %v1759_v0 = vld [vmem:[%s2262_s14 + $0x8] sm:$0xff]  }
 0x5e8   : > { %1664 = vmatpush3.bf16.msra.mxu1 %v1759_v0 }
 0x5e9   : > { %v1195_v24 = vsel %vm611_vm0, %v2137_v22, 0.0 }
 0x5ea   : > { %1196 = vadd.xlane.f32.xlu0 %v1195_v24 }
 0x677   : > { %v1197_v25 = vpop.xlane.xlu0 %1196 }
 0x678   : > { %v1198_v26 = vmul.f32 0.03125, %v1197_v25 }
 0x67a   : > { %v1199_v27 = vsub.f32 %v2137_v22, %v1198_v26 }
 0x67c   : > { %v1200_v28 = vmul.f32 %v1199_v27, %v1199_v27 }
 0x67e   : > { %v1201_v29 = vsel %vm611_vm0, %v1200_v28, 0.0 }
 0x67f   : > { %1202 = vadd.xlane.f32.xlu1 %v1201_v29 }
 0x70c   : > { %v1203_v32 = vpop.xlane.xlu1 %1202 }
 0x70d   : > { %v1204_v33 = vmul.f32 0.032258064, %v1203_v32 }
 0x70f   : > { %1786 = vrsqrt.f32 %v1204_v33  ;;  %vm1207_vm10 = vcmp.eq.f32.partialorder %v1204_v33, inf  ;;  %v1210_v36 = vand.u32 2147483648, %v1204_v33  ;;  %vm1209_vm11 = vcmp.eq.f32.partialorder %v1204_v33, 0.0 }
 0x719   : > { %v1787_v34 = vpop.eup %1786 }
 0x71a   : > { %v1206_v35 = vmul.f32 %v1787_v34, %v1204_v33 }
 0x71c   : > { %v1208_v37 = vsel %vm1207_vm10, %v1204_v33, %v1206_v35 }
 0x71d   : > { %v1211_v38 = vsel %vm1209_vm11, %v1210_v36, %v1208_v37 }
 0x71e   : > { %v1212_v39 = vadd.f32 1e-06, %v1211_v38 }
 0x720   : > { %1788 = vrcp.f32 %v1212_v39 }
 0x72a   : > { %v1789_v40 = vpop.eup %1788 }
 0x72b   : > { %v1214_v43 = vmul.f32 %v1789_v40, %v1199_v27 }
 0x72d   : > { %v1221_v45 = vmul.f32 %v1554_v41, %v1214_v43 }
 0x72f   : > { %v1228_v46 = vadd.f32 %v1555_v44, %v1221_v45 }
 0x731   : > { %v1229_v47 = vpack.c.bf16 %v1228_v46, %v1228_v46 }
 0x733   : > { %1666 = vmatmul.mubr.msk.bf16.vlgmr.msra.gmra.mrb[20].mxu1 %vm611_vm0, %v1229_v47 }
 0x806   : > { %v1290_v56 = vpop.f32.mrb[20].mxu1 }
 0x807   : > { %v1291_v57 = vadd.f32 %v1556_v55, %v1290_v56  ;;  %v1667_v58 = vpop.f32.mrb[21].mxu1 }
 0x808   : > { %v1293_v59 = vpop.f32.mrb[22].mxu1 }
 0x809   : > { %v1297_v60 = vmul.f32 0.044715, %v1291_v57  ;;  %v1668_v61 = vpop.f32.mrb[23].mxu1  ;;  %v1296_v42 = vmul.f32 0.5, %v1291_v57 }
 0x80b   : > { %v1298_v62 = vmul.f32 %v1297_v60, %v1291_v57 }
 0x80d   : > { %v1299_v63 = vmul.f32 %v1298_v62, %v1291_v57 }
 0x80f   : > { %v1300_v1 = vadd.f32 %v1299_v63, %v1291_v57 }
 0x811   : > { %v1301_v2 = vmul.f32 0.7978846, %v1300_v1 }
 0x813   : > { %1790 = vtanh.f32 %v1301_v2 }
 0x81d   : > { %v1791_v3 = vpop.eup %1790 }
 0x81e   : > { %v1303_v4 = vadd.f32 1.0, %v1791_v3 }
 0x820   : > { %v1304_v5 = vmul.f32 %v1303_v4, %v1296_v42 }
 0x822   : > { %v1305_v6 = vpack.c.bf16 %v1304_v5, %v1304_v5 }
 0x824   : > { %1686 = vmatmul.mubr.bf16.vlgmr.msra.gmra.mrb[8].mxu0 %v1305_v6 }
 0x8f7   : > { %v1411_v8 = vpop.f32.mrb[8].mxu0 }
 0x8f8   : > { %v1412_v9 = vadd.f32 %v1560_v7, %v1411_v8  ;;  %v1687_v10 = vpop.f32.mrb[9].mxu0 }
 0x8f9   : > { %v1414_v11 = vpop.f32.mrb[10].mxu0 }
 0x8fa   : > { %v1417_v12 = vadd.f32 %v1412_v9, %v2137_v22  ;;  %v1688_v13 = vpop.f32.mrb[11].mxu0 }
 0x8fc   : > { %1418 = vst.msk [vmem:[%s596_s4] sm:$0xff] %vm611_vm0, %v1417_v12 }
 0x8fd   : > { %1805 = shalt.err (!%p1802_p5)
}
 0x8fe   : > { %s1806_s5 = scalar_lea.hbm %s2200_s6, 128  ;;  %s1810_s4 = scalar_lea.hbm %s2266_s18, 256 }
 0x8ff   : > { %p1807_p6 = scmp.ne.s32.totalorder %s2200_s6, %s1806_s5  ;;  %p1811_p10 = scmp.lt.u32.totalorder %s2200_s6, %s2266_s18 }
 0x900   : > { %p1812_p11 = scmp.lt.u32.totalorder %s1810_s4, %s1806_s5  ;;  %p1814_p13 = scmp.lt.u32.totalorder %s1806_s5, %s2200_s6 }
 0x901   : > { %p1808_p7 = pnand %p1807_p6, %p2010_p4 }
 0x902   : > { %p1813_p12 = por %p1812_p11, %p1811_p10 }
 0x903   : > { %p1809_p9 = pneg %p1808_p7 }
 0x904   : > { %p1815_p0 = por %p1814_p13, %p1813_p12 }
 0x906   : > { %p1816_p1 = pnand %p1815_p0, %p1809_p9 }
 0x908   : > { %1819 = shalt.err (!%p1816_p1)
}
 0x909   : > { %1691 = dma.vmem_to_hbm [thread:$0]  (%p2010_p4), %s2202_s22, 128, %s2200_s6, %s1420_s30  }
 0x90a PF: > { %s2293_s7 = sld [smem:[#allocation5_spill]]  ;;  %p1697_p2 = scmp.ge.s32.totalorder %s1870_s19, 2 }
 0x90c   : > { %p1694_p3 = pnand %p1697_p2, %p2017_p8 }
 0x910   : > { %s1446_s20 = sand.u32 1, %s2293_s7  }
 0x911   : > { %s1447_s27 = scalar_lea.sflag [#allocation3], %s1446_s20 }
 0x912   : > { %1845 = dma.done.wait (!%p1694_p3), %s1447_s27, 128  }
 0x913   : > { %1847 = vsyncadd (!%p1694_p3), %s1447_s27, 4294967168  ;;  %s31_s19 = sadd.s32 1, %s1870_s19   ;;  %s2294_s30 = sld [smem:[#allocation6_spill]] }
 0x914   : > { %p28_p5 = scmp.ge.s32.totalorder %s31_s19, 4   ;;  %s2295_s0 = sld [smem:[#allocation7_spill]] }
 0x915   : > { %s2296_s27 = smov %s1854_s28  ;;  %s2297_s28 = smov %s1858_s29 }
 0x916   : > { %s2298_s29 = smov %s2023_s25  ;;  %30 = sbr.rel (!%p28_p5) target bundleno = 13 (0xd), region = 131 }
 0x91d   :  { %1452 = vsyncpa [#allocation3], 1 }
 0x91e   :  { %1454 = vsyncpa [#allocation3 + $0x1], 1 }

</bundles_post_ra>
